<compile_context>
chip_gen: v7x
topology: tpu7x:2x2x1
jax: 0.10.0
libtpu: 0.0.40
codegen_flags: <defaults>
</compile_context>

<pallas_src>
import math

import jax
import jax.numpy as jnp
from jax.experimental import pallas as pl
from jax.experimental.pallas import tpu as pltpu


# ---------------------------------------------------------------------------
# In-kernel per-tile helpers (shared by single-K and multi-K kernels)
# ---------------------------------------------------------------------------
def _train_partial(x_ref, wmu_ref, wsig_ref, ein_ref, eout_ref, k):
    """Tile contribution:  x_k @ Wmu_kj + eps_out_j * ((x_k*eps_in_k) @ Wsig_kj)."""
    tk = wmu_ref.shape[0]
    off = pl.multiple_of(k * tk, 128)
    x = x_ref[:, pl.ds(off, tk)]                     # f32 (B, tk); x resident in VMEM
    ein = ein_ref[:, pl.ds(off, tk)]                 # f32 (1, tk)
    # Only the MXU operands are cast to the (possibly bf16) weight dtype;
    # accumulation and all VPU math stay f32 (v5e has no bf16 VPU).
    part = jnp.dot(x.astype(wmu_ref.dtype), wmu_ref[...],
                   preferred_element_type=jnp.float32)
    part += eout_ref[...] * jnp.dot((x * ein).astype(wsig_ref.dtype), wsig_ref[...],
                                    preferred_element_type=jnp.float32)
    return part


def _mu_partial(x_ref, wmu_ref, k):
    tk = wmu_ref.shape[0]
    off = pl.multiple_of(k * tk, 128)
    x = x_ref[:, pl.ds(off, tk)]
    return jnp.dot(x.astype(wmu_ref.dtype), wmu_ref[...],
                   preferred_element_type=jnp.float32)


# ---------------------------------------------------------------------------
# Kernels
# ---------------------------------------------------------------------------
def _noisy_train_single_k(x_ref, wmu_ref, wsig_ref, ein_ref, eout_ref,
                          bmu_ref, bsig_ref, o_ref):
    """Training, whole K in one block: no accumulator, write output directly."""
    part = _train_partial(x_ref, wmu_ref, wsig_ref, ein_ref, eout_ref,
                          pl.program_id(1))
    o_ref[...] = (part + bmu_ref[...]
                  + bsig_ref[...] * eout_ref[...]).astype(o_ref.dtype)


def _noisy_train_multi_k(x_ref, wmu_ref, wsig_ref, ein_ref, eout_ref,
                         bmu_ref, bsig_ref, o_ref, acc_ref):
    """Training, K-tiled reduction with f32 VMEM accumulator."""
    k = pl.program_id(1)

    @pl.when(k == 0)
    def _():
        acc_ref[...] = jnp.zeros_like(acc_ref)

    acc_ref[...] += _train_partial(x_ref, wmu_ref, wsig_ref, ein_ref, eout_ref, k)

    @pl.when(k == pl.num_programs(1) - 1)
    def _():
        o_ref[...] = (acc_ref[...] + bmu_ref[...]
                      + bsig_ref[...] * eout_ref[...]).astype(o_ref.dtype)


def _mu_single_k(x_ref, wmu_ref, bmu_ref, o_ref):
    """Eval, single K block: y = x @ Wmu + b_mu."""
    part = _mu_partial(x_ref, wmu_ref, pl.program_id(1))
    o_ref[...] = (part + bmu_ref[...]).astype(o_ref.dtype)


def _mu_multi_k(x_ref, wmu_ref, bmu_ref, o_ref, acc_ref):
    """Eval, K-tiled reduction."""
    k = pl.program_id(1)

    @pl.when(k == 0)
    def _():
        acc_ref[...] = jnp.zeros_like(acc_ref)

    acc_ref[...] += _mu_partial(x_ref, wmu_ref, k)

    @pl.when(k == pl.num_programs(1) - 1)
    def _():
        o_ref[...] = (acc_ref[...] + bmu_ref[...]).astype(o_ref.dtype)


# ---------------------------------------------------------------------------
# Wrapper
# ---------------------------------------------------------------------------
def _round_up(n, m):
    return ((n + m - 1) // m) * m


def _pick_tile(dim_padded, target):
    """Largest multiple of 128 <= target that divides dim_padded (a 128-multiple)."""
    t = (min(target, dim_padded) // 128) * 128
    t = max(t, 128)
    while t > 128 and dim_padded % t != 0:
        t -= 128
    return t


def _pad2(a, rows, cols):
    pr, pc = rows - a.shape[0], cols - a.shape[1]
    if pr == 0 and pc == 0:
        return a
    return jnp.pad(a, ((0, pr), (0, pc)))


def noisy_linear_forward(x, weight_mu_t, weight_sigma_t, bias_mu, bias_sigma,
                         eps_in, eps_out, *, training=True,
                         block_k=1024, block_n=512):
    """Pallas TPU implementation of NoisyLinear.forward.

    weight_*_t are stored pre-transposed as (in_features, out_features) so the MXU
    contracts directly and the output lane axis is out_features (lane-dense stores).
    """
    batch, in_features = x.shape
    assert weight_mu_t.shape[0] == in_features
    out_features = weight_mu_t.shape[1]

    # Pad K / N to multiples of 128 (robust for any layer size, incl. v7x 64 MiB VMEM).
    kp = _round_up(in_features, 128)
    np_ = _round_up(out_features, 128)
    tk = _pick_tile(kp, block_k)
    tn = _pick_tile(np_, block_n)
    # v7x has 2 TensorCores; give the "parallel" j axis >= 2 tiles when possible.
    if np_ // tn < 2 and np_ > 128:
        t = ((np_ // 2) // 128) * 128
        while t > 128 and np_ % t != 0:
            t -= 128
        if t >= 128 and np_ % t == 0:
            tn = t

    k_steps = kp // tk
    j_tiles = np_ // tn

    # TODO(synk): in a real module, store the parameters pre-padded / pre-cast so the
    # pads below are no-ops on every call (they already are for 128-aligned layers).
    xp = _pad2(x, batch, kp)
    wmu = _pad2(weight_mu_t, kp, np_)
    bmu2 = _pad2(bias_mu.reshape(1, -1), 1, np_)

    x_spec = pl.BlockSpec((batch, kp), lambda j, k: (0, 0))     # resident across grid
    w_spec = pl.BlockSpec((tk, tn), lambda j, k: (k, j))
    rowk_spec = pl.BlockSpec((1, kp), lambda j, k: (0, 0))      # eps_in resident
    rown_spec = pl.BlockSpec((1, tn), lambda j, k: (0, j))
    out_spec = pl.BlockSpec((batch, tn), lambda j, k: (0, j))

    compiler_params = pltpu.CompilerParams(
        dimension_semantics=("parallel", "arbitrary"),
        vmem_limit_bytes=48 * 1024 * 1024)
    scratch = [] if k_steps == 1 else [pltpu.VMEM((batch, tn), jnp.float32)]
    out_shape = jax.ShapeDtypeStruct((batch, np_), x.dtype)

    if training:
        wsig = _pad2(weight_sigma_t, kp, np_)
        ein2 = _pad2(eps_in.reshape(1, -1), 1, kp)
        eout2 = _pad2(eps_out.reshape(1, -1), 1, np_)
        bsig2 = _pad2(bias_sigma.reshape(1, -1), 1, np_)
        kernel = _noisy_train_single_k if k_steps == 1 else _noisy_train_multi_k
        in_specs = [x_spec, w_spec, w_spec, rowk_spec, rown_spec,
                    rown_spec, rown_spec]
        args = (xp, wmu, wsig, ein2, eout2, bmu2, bsig2)
    else:
        # Eval path: only mu tensors are passed -> sigma/epsilon never leave HBM.
        kernel = _mu_single_k if k_steps == 1 else _mu_multi_k
        in_specs = [x_spec, w_spec, rown_spec]
        args = (xp, wmu, bmu2)

    out = pl.pallas_call(
        kernel,
        out_shape=out_shape,
        grid_spec=pltpu.PrefetchScalarGridSpec(
            num_scalar_prefetch=0,
            grid=(j_tiles, k_steps),                # reduction (K) axis last
            in_specs=in_specs,
            out_specs=out_spec,
            scratch_shapes=scratch),
        compiler_params=compiler_params,
    )(*args)

    return out[:, :out_features] if np_ != out_features else out


# ---------------------------------------------------------------------------
# Deterministic parameter / noise construction (mirrors PyTorch __init__ /
# reset_parameters / reset_noise). Weights stored pre-transposed (in, out).
# ---------------------------------------------------------------------------
def _scale_noise(key, size):
    x = jax.random.normal(key, (size,), dtype=jnp.float32)
    return jnp.sign(x) * jnp.sqrt(jnp.abs(x))


def init_noisy_linear(key, in_features, out_features, std_init=0.5,
                      param_dtype=jnp.bfloat16):
    k_wmu, k_bmu, k_ein, k_eout = jax.random.split(key, 4)
    mu_range = 1.0 / math.sqrt(in_features)

    weight_mu_t = jax.random.uniform(
        k_wmu, (in_features, out_features), jnp.float32,
        -mu_range, mu_range).astype(param_dtype)
    weight_sigma_t = jnp.full((in_features, out_features),
                              std_init / math.sqrt(in_features), param_dtype)
    bias_mu = jax.random.uniform(
        k_bmu, (out_features,), jnp.float32, -mu_range, mu_range)
    bias_sigma = jnp.full((out_features,),
                          std_init / math.sqrt(out_features), jnp.float32)

    # Factorized noise kept as its two rank-1 factors
    # (dense weight_epsilon = outer(eps_out, eps_in) is never materialized).
    eps_in = _scale_noise(k_ein, in_features)
    eps_out = _scale_noise(k_eout, out_features)

    return dict(weight_mu_t=weight_mu_t, weight_sigma_t=weight_sigma_t,
                bias_mu=bias_mu, bias_sigma=bias_sigma,
                eps_in=eps_in, eps_out=eps_out)


def _reference(x, params, training):
    """Same math as the PyTorch module (f32, dense epsilon reconstructed)."""
    w_mu = params["weight_mu_t"].astype(jnp.float32)          # (in, out)
    w_sig = params["weight_sigma_t"].astype(jnp.float32)
    if training:
        w_eps = jnp.outer(params["eps_in"], params["eps_out"])  # (in, out)
        w_eff = w_mu + w_sig * w_eps
        b_eff = params["bias_mu"] + params["bias_sigma"] * params["eps_out"]
        return x @ w_eff + b_eff
    return x @ w_mu + params["bias_mu"]


if __name__ == "__main__":
    key = jax.random.PRNGKey(0)
    k1, k2, kx1, kx2 = jax.random.split(key, 4)

    # --- Case 1: default perf config (bf16 weights), 128-aligned Rainbow-ish layer.
    #     Single K block (fast path), 2 output tiles on the parallel axis.
    batch, in_f, out_f = 8, 256, 256
    params = init_noisy_linear(k1, in_f, out_f)                    # bf16 weights
    x = jax.random.normal(kx1, (batch, in_f), dtype=jnp.float32)

    y_train = noisy_linear_forward(x, **params, training=True)
    y_eval = noisy_linear_forward(x, **params, training=False)
    jax.block_until_ready((y_train, y_eval))

    ref_train = _reference(x, params, True)
    ref_eval = _reference(x, params, False)
    assert jnp.allclose(y_train, ref_train, atol=5e-2, rtol=2e-2), "bf16 training mismatch"
    assert jnp.allclose(y_eval, ref_eval, atol=5e-2, rtol=2e-2), "bf16 eval mismatch"

    # --- Case 2: f32 weights, non-128-aligned shapes; exercises the padding path and
    #     the multi-K accumulator kernels, with a tight numerical check.
    batch2, in_f2, out_f2 = 8, 300, 130
    params2 = init_noisy_linear(k2, in_f2, out_f2, param_dtype=jnp.float32)
    x2 = jax.random.normal(kx2, (batch2, in_f2), dtype=jnp.float32)

    y2_train = noisy_linear_forward(x2, **params2, training=True,
                                    block_k=128, block_n=128)
    y2_eval = noisy_linear_forward(x2, **params2, training=False,
                                   block_k=128, block_n=128)
    jax.block_until_ready((y2_train, y2_eval))

    ref2_train = _reference(x2, params2, True)
    ref2_eval = _reference(x2, params2, False)
    assert jnp.allclose(y2_train, ref2_train, atol=2e-4, rtol=1e-5), "f32 training mismatch"
    assert jnp.allclose(y2_eval, ref2_eval, atol=2e-4, rtol=1e-5), "f32 eval mismatch"

    print("KERNEL_OK")
</pallas_src>

<mosaic_0001>
module attributes {stable_mosaic.version = 11 : i64} {
  func.func @_noisy_train_single_k(%arg0: i32, %arg1: i32, %arg2: memref<8x256xf32, #tpu.memory_space<vmem>>, %arg3: memref<256x128xbf16, #tpu.memory_space<vmem>>, %arg4: memref<256x128xbf16, #tpu.memory_space<vmem>>, %arg5: memref<1x256xf32, #tpu.memory_space<vmem>>, %arg6: memref<1x128xf32, #tpu.memory_space<vmem>>, %arg7: memref<1x128xf32, #tpu.memory_space<vmem>>, %arg8: memref<1x128xf32, #tpu.memory_space<vmem>>, %arg9: memref<8x128xf32, #tpu.memory_space<vmem>>) attributes {dimension_semantics = [#tpu.dimension_semantics<parallel>, #tpu.dimension_semantics<arbitrary>], iteration_bounds = array<i64: 2, 1>, scalar_prefetch = 0 : i64, scratch_operands = 0 : i64, tpu.core_type = #tpu.core_type<tc>, window_params = [{pipeline_mode = #tpu.pipeline_mode<synchronous>, transform_indices = @transform_0, window_bounds = array<i64: 8, 256>}, {transform_indices = @transform_1, window_bounds = array<i64: 256, 128>}, {transform_indices = @transform_2, window_bounds = array<i64: 256, 128>}, {pipeline_mode = #tpu.pipeline_mode<synchronous>, transform_indices = @transform_3, window_bounds = array<i64: 1, 256>}, {transform_indices = @transform_4, window_bounds = array<i64: 1, 128>}, {transform_indices = @transform_5, window_bounds = array<i64: 1, 128>}, {transform_indices = @transform_6, window_bounds = array<i64: 1, 128>}, {transform_indices = @transform_7, window_bounds = array<i64: 8, 128>}]} {
    %c256_i32 = arith.constant 256 : i32
    %0 = arith.muli %arg1, %c256_i32 : i32
    %1 = tpu.assume_multiple %0, 128 : i32
    %c0 = arith.constant 0 : index
    %2 = arith.index_cast %1 : i32 to index
    %3 = vector.load %arg2[%c0, %2] : memref<8x256xf32, #tpu.memory_space<vmem>>, vector<8x256xf32>
    %c0_0 = arith.constant 0 : index
    %4 = arith.index_cast %1 : i32 to index
    %5 = vector.load %arg5[%c0_0, %4] : memref<1x256xf32, #tpu.memory_space<vmem>>, vector<1x256xf32>
    %6 = arith.truncf %3 : vector<8x256xf32> to vector<8x256xbf16>
    %c0_1 = arith.constant 0 : index
    %c0_2 = arith.constant 0 : index
    %7 = vector.load %arg3[%c0_1, %c0_2] : memref<256x128xbf16, #tpu.memory_space<vmem>>, vector<256x128xbf16>
    %cst = arith.constant dense<0.000000e+00> : vector<8x128xf32>
    %8 = tpu.matmul %6, %7, %cst {dimension_numbers = #tpu.dot_dimension_numbers<[1], [0], [0], [1], [0, 0, 1, 1], [], []>} : vector<8x256xbf16>, vector<256x128xbf16>, vector<8x128xf32> -> vector<8x128xf32>
    %c0_3 = arith.constant 0 : index
    %c0_4 = arith.constant 0 : index
    %9 = vector.load %arg6[%c0_3, %c0_4] : memref<1x128xf32, #tpu.memory_space<vmem>>, vector<1x128xf32>
    %10 = vector.broadcast %5 : vector<1x256xf32> to vector<8x256xf32>
    %11 = arith.mulf %3, %10 : vector<8x256xf32>
    %12 = arith.truncf %11 : vector<8x256xf32> to vector<8x256xbf16>
    %c0_5 = arith.constant 0 : index
    %c0_6 = arith.constant 0 : index
    %13 = vector.load %arg4[%c0_5, %c0_6] : memref<256x128xbf16, #tpu.memory_space<vmem>>, vector<256x128xbf16>
    %cst_7 = arith.constant dense<0.000000e+00> : vector<8x128xf32>
    %14 = tpu.matmul %12, %13, %cst_7 {dimension_numbers = #tpu.dot_dimension_numbers<[1], [0], [0], [1], [0, 0, 1, 1], [], []>} : vector<8x256xbf16>, vector<256x128xbf16>, vector<8x128xf32> -> vector<8x128xf32>
    %15 = vector.broadcast %9 : vector<1x128xf32> to vector<8x128xf32>
    %16 = arith.mulf %15, %14 : vector<8x128xf32>
    %17 = arith.addf %8, %16 : vector<8x128xf32>
    %c0_8 = arith.constant 0 : index
    %c0_9 = arith.constant 0 : index
    %18 = vector.load %arg7[%c0_8, %c0_9] : memref<1x128xf32, #tpu.memory_space<vmem>>, vector<1x128xf32>
    %19 = vector.broadcast %18 : vector<1x128xf32> to vector<8x128xf32>
    %20 = arith.addf %17, %19 : vector<8x128xf32>
    %c0_10 = arith.constant 0 : index
    %c0_11 = arith.constant 0 : index
    %21 = vector.load %arg8[%c0_10, %c0_11] : memref<1x128xf32, #tpu.memory_space<vmem>>, vector<1x128xf32>
    %c0_12 = arith.constant 0 : index
    %c0_13 = arith.constant 0 : index
    %22 = vector.load %arg6[%c0_12, %c0_13] : memref<1x128xf32, #tpu.memory_space<vmem>>, vector<1x128xf32>
    %23 = arith.mulf %21, %22 : vector<1x128xf32>
    %24 = vector.broadcast %23 : vector<1x128xf32> to vector<8x128xf32>
    %25 = arith.addf %20, %24 : vector<8x128xf32>
    %c0_14 = arith.constant 0 : index
    %c0_15 = arith.constant 0 : index
    %26 = vector.load %arg9[%c0_14, %c0_15] : memref<8x128xf32, #tpu.memory_space<vmem>>, vector<8x128xf32>
    tpu.vector_store %arg9[%c0_14, %c0_15], %25 {strides = array<i32>} : memref<8x128xf32, #tpu.memory_space<vmem>>, vector<8x128xf32>,
    return
  }
  func.func @transform_0(%arg0: i32, %arg1: i32) -> (i32, i32) {
    %c0_i32 = arith.constant 0 : i32
    %c0_i32_0 = arith.constant 0 : i32
    %c0_i32_1 = arith.constant 0 : i32
    return %c0_i32, %c0_i32_0 : i32, i32
  }
  func.func @transform_1(%arg0: i32, %arg1: i32) -> (i32, i32) {
    %c0_i32 = arith.constant 0 : i32
    return %arg1, %arg0 : i32, i32
  }
  func.func @transform_2(%arg0: i32, %arg1: i32) -> (i32, i32) {
    %c0_i32 = arith.constant 0 : i32
    return %arg1, %arg0 : i32, i32
  }
  func.func @transform_3(%arg0: i32, %arg1: i32) -> (i32, i32) {
    %c0_i32 = arith.constant 0 : i32
    %c0_i32_0 = arith.constant 0 : i32
    %c0_i32_1 = arith.constant 0 : i32
    return %c0_i32, %c0_i32_0 : i32, i32
  }
  func.func @transform_4(%arg0: i32, %arg1: i32) -> (i32, i32) {
    %c0_i32 = arith.constant 0 : i32
    %c0_i32_0 = arith.constant 0 : i32
    return %c0_i32, %arg0 : i32, i32
  }
  func.func @transform_5(%arg0: i32, %arg1: i32) -> (i32, i32) {
    %c0_i32 = arith.constant 0 : i32
    %c0_i32_0 = arith.constant 0 : i32
    return %c0_i32, %arg0 : i32, i32
  }
  func.func @transform_6(%arg0: i32, %arg1: i32) -> (i32, i32) {
    %c0_i32 = arith.constant 0 : i32
    %c0_i32_0 = arith.constant 0 : i32
    return %c0_i32, %arg0 : i32, i32
  }
  func.func @transform_7(%arg0: i32, %arg1: i32) -> (i32, i32) {
    %c0_i32 = arith.constant 0 : i32
    %c0_i32_0 = arith.constant 0 : i32
    return %c0_i32, %arg0 : i32, i32
  }
}

</mosaic_0001>

<bundles_post_ra>
// kernel: tpu_custom_call.1
= control target key start
LH: loop header
LB: loop body
LE: loop exit
PB: predicated region body
PF: predicated region fallthrough
CT: control target
= control target key end

     0   :  { %s1703_s0 = inlined_call_operand.hbm [shape: f32[8,256], index: 0, kind: input, shape index: {}]   ;;  %s1704_s1 = inlined_call_operand.hbm [shape: bf16[256,256], index: 1, kind: input, shape index: {}]   ;;  %s1705_s2 = inlined_call_operand.hbm [shape: bf16[256,256], index: 2, kind: input, shape index: {}]   ;;  %s1706_s3 = inlined_call_operand.vmem [shape: f32[1,256], index: 3, kind: input, shape index: {}]   ;;  %s1707_s4 = inlined_call_operand.vmem [shape: f32[1,256], index: 4, kind: input, shape index: {}]   ;;  %s1708_s5 = inlined_call_operand.vmem [shape: f32[1,256], index: 5, kind: input, shape index: {}]   ;;  %s1709_s6 = inlined_call_operand.vmem [shape: f32[1,256], index: 6, kind: input, shape index: {}]   ;;  %s1710_s7 = inlined_call_operand.hbm [shape: f32[8,256], index: 7, kind: output, shape index: {}]  }
   0x1   :  { %1719 = sst [smem:[#allocation13_spill]] %s1704_s1 }
   0x2   :  { %1720 = sst [smem:[#allocation14_spill]] %s1705_s2 }
   0x3   :  { %12 = vsyncpa [#allocation3], 0 }
   0x4   :  { %13 = vsyncpa [#allocation6], 0 }
   0x5   :  { %15 = vsyncpa [#allocation6 + $0x1], 0 }
   0x6   :  { %16 = vsyncpa [#allocation4], 0 }
   0x7   :  { %18 = vsyncpa [#allocation4 + $0x1], 0  ;;  %s1389_s24 = smov 0   ;;  %s1391_s25 = smov 0  }
   0x8   :  { %s1393_s26 = smov 0   ;;  %s1395_s27 = smov 0  }
   0x9   :  { %s1397_s28 = smov 0   ;;  %s1399_s29 = smov 0  }
   0xa LB: > { %s36_s30 = sadd.s32 1, %s1336_s28  ;;  %s66_s8 = sadd.s32 1, %s1328_s26  ;;  %s1340_s29 = sphi %s1399_s29, %s24_s29   ;;  %s1336_s28 = sphi %s1397_s28, %s1747_s28   ;;  %s1332_s27 = sphi %s1395_s27, %s1746_s27   ;;  %s1328_s26 = sphi %s1393_s26, %s1745_s26   ;;  %s1324_s25 = sphi %s1391_s25, %s1744_s25   ;;  %s1320_s24 = sphi %s1389_s24, %s1743_s24  }
   0xb   : > { %p38_p0 = scmp.ge.s32.totalorder %s36_s30, 2  ;;  %p73_p1 = scmp.ne.s32.totalorder %s1328_s26, %s1324_s25 }
   0xc   : > { %p74_p2 = scmp.eq.s32.totalorder %s1340_s29, 0  ;;  %p1079_p5 = scmp.lt.s32.totalorder %s1340_s29, 2 }
   0xd   : > { %s1749_s30 = smov (%p38_p0, %s36_s30), 0  ;;  %s270_s10 = sand.u32 1, %s1340_s29  }
   0xe   : > { %1721 = sst [smem:[#allocation12_spill]] %s1749_s30  ;;  %p75_p4 = por %p74_p2, %p73_p1 }
   0xf   : > { %s62_s9 = ssub.s32 %s1336_s28, %s1749_s30  ;;  %s272_s11 = sand.u32 1, %s1328_s26  }
  0x10   : > { %p64_p6 = scmp.eq.s32.totalorder %s62_s9, 0  ;;  %s964_s12 = sshll.u32 %s1336_s28, 6 }
  0x11   : > { %s1439_s14 = sshll.u32 %s272_s11, 7  ;;  %s1722_s1 = sld [smem:[#allocation13_spill]] }
  0x12   : > { %s1437_s13 = scalar_select %p64_p6, %s1328_s26, %s66_s8  }
  0x13   : > { %p1448_p7 = pnand %p1079_p5, %p75_p4  ;;  %s274_s19 = scalar_lea.vmem [#allocation5], %s1439_s14 }
  0x14   : > { %s283_s20 = sshll.u32 %s274_s19, 4  ;;  %s1455_s21 = scalar_lea.sflag [#allocation6], %s270_s10  ;;  %s1453_s20 = int_to_ptr.vmem [resolvable:$true] %s283_s20 }
  0x15   : > { %p1168_p9 = pneg %p1448_p7 }
  0x17   : > { %s1446_s17 = scalar_lea.hbm %s1722_s1, %s964_s12  ;;  %s1171_s9 = scalar_lea.hbm %s1722_s1, 4096 }
  0x18   : > { %s1166_s22 = scalar_lea.hbm %s1446_s17, 2048  ;;  %p1172_p12 = scmp.lt.u32.totalorder %s1446_s17, %s1722_s1 }
  0x19   : > { %p1167_p8 = scmp.ne.s32.totalorder %s1446_s17, %s1166_s22  ;;  %p1173_p13 = scmp.lt.u32.totalorder %s1171_s9, %s1166_s22 }
  0x1a   : > { %p1175_p2 = scmp.lt.u32.totalorder %s1166_s22, %s1446_s17 }
  0x1b   : > { %p1169_p10 = pnand %p1168_p9, %p1167_p8  ;;  %p1174_p0 = por %p1173_p13, %p1172_p12 }
  0x1d   : > { %p1170_p11 = pneg %p1169_p10  ;;  %p1176_p4 = por %p1175_p2, %p1174_p0 }
  0x1f   : > { %p1177_p5 = pnand %p1176_p4, %p1170_p11 }
  0x21   : > { %1180 = shalt.err (!%p1177_p5)
}
  0x22   : > { %s1181_s10 = scalar_lea.vmem %s1453_s20, 2048  ;;  %s1342_s16 = smov [#allocation5]  }
  0x23   : > { %p1182_p6 = scmp.ne.s32.totalorder %s1453_s20, %s1181_s10  ;;  %s1186_s19 = sshll.u32 %s1342_s16, 4  ;;  %s1187_s19 = int_to_ptr.vmem [resolvable:$false] %s1186_s19 }
  0x24   : > { %s1188_s23 = scalar_lea.vmem %s1187_s19, 4096  ;;  %p1189_p3 = scmp.lt.s32.totalorder %s1453_s20, %s1187_s19 }
  0x25   : > { %p1184_p8 = pnand %p1182_p6, %p1168_p9  ;;  %p1190_p12 = scmp.lt.s32.totalorder %s1188_s23, %s1181_s10 }
  0x27   : > { %p1185_p10 = pneg %p1184_p8  ;;  %p1191_p13 = por %p1190_p12, %p1189_p3 }
  0x29   : > { %p1192_p0 = pnand %p1191_p13, %p1185_p10 }
  0x2b   : > { %1195 = shalt.err (!%p1192_p0)
}
  0x2c   : > { %s1711_s22 = smov 128   ;;  %s1712_s8 = smov 64  }
  0x2d   : > { %s1713_s9 = smov 4   ;;  %s297_s11 = scalar_lea.vmem [#allocation7], %s1439_s14 }
  0x2e   : > { %1070 = dma.hbm_to_vmem [thread:$0]  (!%p1448_p7), %s1446_s17, 2048, %s1453_s20, %s1455_s21, %s1711_s22, %s1712_s8, %s1713_s9  }
  0x2f   : > { %s306_s15 = sshll.u32 %s297_s11, 4  ;;  %s1488_s10 = sadd.s32 4294967295, %s1340_s29   ;;  %s1521_s15 = int_to_ptr.vmem [resolvable:$true] %s306_s15 }
  0x30   : > { %s959_s16 = sadd.s32 4294967294, %s1340_s29   ;;  %p79_p3 = scmp.ne.s32.totalorder %s1324_s25, %s1320_s24 }
  0x31   : > { %p1715_p11 = scmp.eq.s32.totalorder %s1488_s10, 0  ;;  %p230_p2 = scmp.eq.s32.totalorder %s1488_s10, 1 }
  0x32   : > { %p236_p4 = scmp.eq.s32.totalorder %s959_s16, 1  ;;  %p960_p6 = scmp.ge.s32.totalorder %s1340_s29, 1 }
  0x33   : > { %p1497_p5 = por %p1715_p11, %p79_p3  ;;  %p1505_p8 = por %p230_p2, %p73_p1 }
  0x34   : > { %p1509_p10 = por %p236_p4, %p79_p3  ;;  %p243_p12 = scmp.lt.s32.totalorder %s1340_s29, 3 }
  0x35   : > { %s1724_s19 = scalar_select %p1497_p5, 1, 0 }
  0x36   : > { %s1725_s14 = scalar_select %p1505_p8, 1, 0 }
  0x37   : > { %s1726_s17 = scalar_select %p1509_p10, 1, 0 }
  0x38   : > { %s1727_s2 = sld [smem:[#allocation14_spill]]  ;;  %p1523_p1 = pnand %p960_p6, %p243_p12 }
  0x39   : > { %s1346_s22 = smov [#allocation2]  }
  0x3a   : > { %s1728_s16 = scalar_select %p1523_p1, 1, 0 }
  0x3b   : > { %s1527_s8 = sshll.u32 %s1346_s22, 4  ;;  %s257_s8 = int_to_ptr.vmem [resolvable:$true] %s1527_s8 }
  0x3e   : > { %s1519_s11 = scalar_lea.hbm %s1727_s2, %s964_s12  ;;  %s1201_s23 = scalar_lea.hbm %s1727_s2, 4096 }
  0x3f   : > { %s1196_s9 = scalar_lea.hbm %s1519_s11, 2048  ;;  %p1202_p4 = scmp.lt.u32.totalorder %s1519_s11, %s1727_s2 }
  0x40   : > { %p1197_p0 = scmp.ne.s32.totalorder %s1519_s11, %s1196_s9  ;;  %p1203_p6 = scmp.lt.u32.totalorder %s1201_s23, %s1196_s9 }
  0x41   : > { %p1205_p11 = scmp.lt.u32.totalorder %s1196_s9, %s1519_s11 }
  0x42   : > { %p1199_p3 = pnand %p1197_p0, %p1168_p9  ;;  %p1204_p12 = por %p1203_p6, %p1202_p4 }
  0x44   : > { %p1200_p2 = pneg %p1199_p3  ;;  %p1206_p10 = por %p1205_p11, %p1204_p12 }
  0x46   : > { %p1207_p8 = pnand %p1206_p10, %p1200_p2 }
  0x48   : > { %1210 = shalt.err (!%p1207_p8)
}
  0x49   : > { %s1211_s22 = scalar_lea.vmem %s1521_s15, 2048  ;;  %s1347_s12 = smov [#allocation7]  }
  0x4a   : > { %p1212_p0 = scmp.ne.s32.totalorder %s1521_s15, %s1211_s22  ;;  %s1216_s20 = sshll.u32 %s1347_s12, 4  ;;  %s1217_s20 = int_to_ptr.vmem [resolvable:$false] %s1216_s20 }
  0x4b   : > { %s1218_s1 = scalar_lea.vmem %s1217_s20, 4096  ;;  %p1219_p5 = scmp.lt.s32.totalorder %s1521_s15, %s1217_s20 }
  0x4c   : > { %p1214_p3 = pnand %p1212_p0, %p1168_p9  ;;  %p1220_p4 = scmp.lt.s32.totalorder %s1218_s1, %s1211_s22 }
  0x4e   : > { %p1215_p13 = pneg %p1214_p3  ;;  %p1221_p6 = por %p1220_p4, %p1219_p5 }
  0x50   : > { %p1222_p11 = pnand %p1221_p6, %p1215_p13 }
  0x52   : > { %1225 = shalt.err (!%p1222_p11)
}
  0x53   : > { %s1729_s30 = smov 4   ;;  %s1730_s9 = smov 64  }
  0x54   : > { %s1731_s23 = smov 128   ;;  %p1732_p9 = scmp.eq.s32.totalorder %s1488_s10, 0 }
  0x55   : > { %1073 = dma.hbm_to_vmem [thread:$0]  (!%p1448_p7), %s1519_s11, 2048, %s1521_s15, %s1455_s21, %s1731_s23, %s1730_s9, %s1729_s30  }
  0x56   : > { %p1733_p8 = pneg %p1523_p1  ;;  %s1226_s20 = scalar_lea.hbm %s1703_s0, 256 }
  0x57   : > { %p1227_p5 = scmp.ne.s32.totalorder %s1703_s0, %s1226_s20  ;;  %p1233_p12 = scmp.lt.u32.totalorder %s1226_s20, %s1703_s0 }
  0x58   : > { %p1564_p10 = pnand %p1733_p8, %p1732_p9 }
  0x5a   : > { %p1228_p13 = pneg %p1564_p10 }
  0x5c   : > { %p1229_p7 = pnand %p1228_p13, %p1227_p5 }
  0x5e   : > { %p1230_p2 = pneg %p1229_p7 }
  0x60   : > { %p1235_p0 = pnand %p1233_p12, %p1230_p2 }
  0x62   : > { %1238 = shalt.err (!%p1235_p0)
}
  0x63   : > { %s1239_s11 = scalar_lea.vmem %s257_s8, 256  ;;  %p1247_p11 = scmp.lt.s32.totalorder %s257_s8, %s257_s8 }
  0x64   : > { %p1240_p3 = scmp.ne.s32.totalorder %s257_s8, %s1239_s11  ;;  %p1248_p9 = scmp.lt.s32.totalorder %s1239_s11, %s1239_s11 }
  0x66   : > { %p1242_p4 = pnand %p1240_p3, %p1228_p13  ;;  %p1249_p8 = por %p1248_p9, %p1247_p11 }
  0x68   : > { %p1243_p6 = pneg %p1242_p4 }
  0x6a   : > { %p1250_p1 = pnand %p1249_p8, %p1243_p6 }
  0x6c   : > { %1253 = shalt.err (!%p1250_p1)
}
  0x6d   : > { %1066 = dma.hbm_to_vmem [thread:$0]  (!%p1564_p10), %s1703_s0, 256, %s257_s8, [#allocation3]  }
  0x6e   : > { %p1735_p5 = scmp.ne.s32.totalorder %s1728_s16, 0 }
  0x6f   : > { %p1736_p7 = scmp.eq.s32.totalorder (!%p1735_p5), %s1488_s10, 0 }
  0x70   : > { %336 = sbr.rel (%p1735_p5) target bundleno = 396 (0x18c), region = 48 }
  0x77   : > { %1307 = dma.done.wait (%p1736_p7), [#allocation3], 256   ;;  %p1737_p13 = pmov %p1736_p7 }
  0x78   : > { %s342_s9 = sand.u32 1, %s1488_s10   ;;  %s1592_s23 = sand.u32 1, %s1324_s25  }
  0x79   : > { %1309 = vsyncadd (%p1737_p13), [#allocation3], 4294967040  ;;  %s969_s22 = sshll.u32 %s1592_s23, 7  ;;  %s343_s12 = scalar_lea.sflag [#allocation6], %s342_s9 }
  0x7a   : > { %s1595_s18 = scalar_lea.vmem [#allocation5], %s969_s22  ;;  %p1738_p1 = scmp.ne.s32.totalorder %s1724_s19, 0 }
  0x7c   : > { %1311 = dma.done.wait (%p1738_p1), %s343_s12, 4096  }
  0x7d   : > { %1313 = vsyncadd (%p1738_p1), %s343_s12, 4294963200  ;;  %s1601_s8 = scalar_lea.vmem [#allocation7], %s969_s22  ;;  %v1135_v1 = vld [vmem:[%s1595_s18 + $0x40] sm:$0xff]   ;;  %v1139_v5 = vld [vmem:[%s1595_s18 + $0x48] sm:$0xff]   ;;  %v457_v21 = vlaneseq  ;;  %p402_p10 = scmp.lt.s32.totalorder %s1332_s27, 1 }
  0x7e   : > { %v1134_v0 = vld [vmem:[%s1601_s8 + $0x40] sm:$0xff]   ;;  %1031 = vmatprep.subr.bf16.mxu1 %v1135_v1  ;;  %v1138_v4 = vld [vmem:[%s1601_s8 + $0x48] sm:$0xff]   ;;  %v1142_v8 = vld [vmem:[%s1601_s8 + $0x50] sm:$0xff]   ;;  %s971_s30 = sshll.u32 %s1592_s23, 3  ;;  %p1739_p12 = scmp.ne.s32.totalorder %s1725_s14, 0 }
  0x7f   : > { %1009 = vmatprep.subr.bf16.mxu0 %v1134_v0  ;;  %v1136_v2 = vld [vmem:[%s1601_s8] sm:$0xff]   ;;  %v1140_v6 = vld [vmem:[%s1601_s8 + $0x8] sm:$0xff]   ;;  %v1143_v9 = vld [vmem:[%s1595_s18 + $0x50] sm:$0xff]   ;;  %v458_v26 = vshrl.u32 %v457_v21, 7  ;;  %s403_s16 = scalar_select %p402_p10, %s1332_s27, 1 }
  0x80   : > { %v1137_v3 = vld [vmem:[%s1595_s18] sm:$0xff]   ;;  %1010 = vmatpush3.bf16.msra.mxu0 %v1136_v2  ;;  %v1141_v7 = vld [vmem:[%s1595_s18 + $0x8] sm:$0xff]   ;;  %v1144_v10 = vld [vmem:[%s1601_s8 + $0x10] sm:$0xff]  }
  0x81   : > { %1032 = vmatpush3.bf16.msra.mxu1 %v1137_v3  ;;  %1011 = vmatprep.subr.bf16.mxu0 %v1138_v4  ;;  %v1145_v11 = vld [vmem:[%s1595_s18 + $0x10] sm:$0xff]   ;;  %v1146_v12 = vld [vmem:[%s1601_s8 + $0x58] sm:$0xff]   ;;  %v1150_v16 = vld [vmem:[%s1601_s8 + $0x60] sm:$0xff]   ;;  %v459_v31 = vsub.s32 0, %v458_v26  ;;  %v463_v33 = vsub.s32 1, %v458_v26  ;;  %s404_s21 = scalar_lea.vmem %s1707_s4, %s403_s16  ;;  %s410_s2 = scalar_lea.vmem %s1709_s6, %s403_s16 }
  0x82   : > { %1033 = vmatprep.subr.bf16.mxu1 %v1139_v5  ;;  %v1147_v13 = vld [vmem:[%s1595_s18 + $0x58] sm:$0xff]   ;;  %v1151_v17 = vld [vmem:[%s1595_s18 + $0x60] sm:$0xff]   ;;  %v1154_v20 = vld [vmem:[%s1601_s8 + $0x68] sm:$0xff]   ;;  %s407_s12 = scalar_lea.vmem %s1708_s5, %s403_s16  ;;  %s801_s16 = scalar_lea.sflag [#allocation4], %s1592_s23 }
  0x83   : > { %v1148_v14 = vld [vmem:[%s1601_s8 + $0x18] sm:$0xff]   ;;  %v1152_v18 = vld [vmem:[%s1601_s8 + $0x20] sm:$0xff]   ;;  %v1155_v22 = vld [vmem:[%s1595_s18 + $0x68] sm:$0xff]  }
  0x84   : > { %1012 = vmatpush3.bf16.msra.mxu0 %v1140_v6  ;;  %v1149_v15 = vld [vmem:[%s1595_s18 + $0x18] sm:$0xff]   ;;  %v1153_v19 = vld [vmem:[%s1595_s18 + $0x20] sm:$0xff]   ;;  %v1156_v23 = vld [vmem:[%s1601_s8 + $0x28] sm:$0xff]  }
  0x85   : > { %1034 = vmatpush3.bf16.msra.mxu1 %v1141_v7  ;;  %1013 = vmatprep.subr.bf16.mxu0 %v1142_v8  ;;  %v1157_v24 = vld [vmem:[%s1595_s18 + $0x28] sm:$0xff]   ;;  %v1158_v25 = vld [vmem:[%s1601_s8 + $0x70] sm:$0xff]   ;;  %v1162_v30 = vld [vmem:[%s1601_s8 + $0x78] sm:$0xff]  }
  0x86   : > { %1035 = vmatprep.subr.bf16.mxu1 %v1143_v9  ;;  %v1159_v27 = vld [vmem:[%s1595_s18 + $0x70] sm:$0xff]   ;;  %v1163_v32 = vld [vmem:[%s1595_s18 + $0x78] sm:$0xff]  }
  0x87   : > { %v1160_v28 = vld [vmem:[%s1601_s8 + $0x30] sm:$0xff]   ;;  %v1164_v34 = vld [vmem:[%s1601_s8 + $0x38] sm:$0xff]   ;;  %s399_s8 = scalar_lea.vmem [#allocation8], %s971_s30 }
  0x88   : > { %1014 = vmatpush3.bf16.msra.mxu0 %v1144_v10  ;;  %v1161_v29 = vld [vmem:[%s1595_s18 + $0x30] sm:$0xff]   ;;  %v1165_v35 = vld [vmem:[%s1595_s18 + $0x38] sm:$0xff]   ;;  %s1006_s18 = sshll.u32 %s1332_s27, 7  ;;  %s814_s10 = sshll.u32 %s399_s8, 4  ;;  %s1656_s10 = int_to_ptr.vmem [resolvable:$true] %s814_s10 }
  0x89   : > { %1036 = vmatpush3.bf16.msra.mxu1 %v1145_v11  ;;  %1015 = vmatprep.subr.bf16.mxu0 %v1146_v12  ;;  %v418_v36 = vld [vmem:[#allocation2 + $0x8] sm:$0xff]  ;;  %v420_v37 = vld [vmem:[%s1706_s3] sm:$0x3]  ;;  %s1654_s1 = scalar_lea.hbm %s1710_s7, %s1006_s18  ;;  %s1348_s27 = smov [#allocation8]  }
  0x8a   : > { %1037 = vmatprep.subr.bf16.mxu1 %v1147_v13  ;;  %v417_v38 = vld [vmem:[#allocation2] sm:$0xff]  ;;  %v460_v39 = vrot.slane %v420_v37, %v459_v31  ;;  %v464_v40 = vrot.slane %v420_v37, %v463_v33  ;;  %v422_v41 = vpack.c.bf16 %v418_v36, %v418_v36  ;;  %s1258_s15 = sshll.u32 %s1348_s27, 4  ;;  %s1259_s15 = int_to_ptr.vmem [resolvable:$false] %s1258_s15 }
  0x8b   : > { %v421_v42 = vpack.c.bf16 %v417_v38, %v417_v38  ;;  %v455_v48 = vld [vmem:[%s404_s21] sm:$0x1]  ;;  %s1254_s21 = scalar_lea.vmem %s1656_s10, 128  ;;  %s1260_s11 = scalar_lea.vmem %s1259_s15, 256 }
  0x8c   : > { %1016 = vmatpush3.bf16.msra.mxu0 %v1148_v14  ;;  %v468_v43 = vmul.f32 %v464_v40, %v418_v36  ;;  %774 = vmatprep.mubr.bf16.mxu1 %v422_v41  ;;  %v467_v44 = vmul.f32 %v460_v39, %v417_v38  ;;  %v790_v52 = vld [vmem:[%s410_s2] sm:$0x1]  ;;  %v643_v55 = vrot.slane %v455_v48, %v459_v31  ;;  %p1255_p2 = scmp.ne.s32.totalorder %s1656_s10, %s1254_s21  ;;  %p1261_p4 = scmp.lt.s32.totalorder %s1656_s10, %s1259_s15 }
  0x8d   : > { %1038 = vmatpush3.bf16.msra.mxu1 %v1149_v15  ;;  %1017 = vmatprep.subr.bf16.mxu0 %v1150_v16  ;;  %v791_v58 = vmul.f32 %v790_v52, %v455_v48  ;;  %v1004_v62 = vld [vmem:[%s407_s12] ss:$0 sm:$0xff]  ;;  %p1262_p6 = scmp.lt.s32.totalorder %s1260_s11, %s1254_s21 }
  0x8e   : > { %1039 = vmatprep.subr.bf16.mxu1 %v1151_v17  ;;  %v470_v45 = vpack.c.bf16 %v468_v43, %v468_v43  ;;  %v469_v46 = vpack.c.bf16 %v467_v44, %v467_v44  ;;  %p1256_p0 = pnand %p1255_p2, %p1739_p12 }
  0x8f   : > { %v796_v0 = vrot.slane %v791_v58, %v459_v31  ;;  %p1263_p11 = por %p1262_p6, %p1261_p4 }
  0x90   : > { %1018 = vmatpush3.bf16.msra.mxu0 %v1152_v18  ;;  %631 = vmatprep.mubr.bf16.mxu0 %v470_v45  ;;  %p1257_p3 = pneg %p1256_p0 }
  0x91   : > { %1040 = vmatpush3.bf16.msra.mxu1 %v1153_v19  ;;  %1019 = vmatprep.subr.bf16.mxu0 %v1154_v20 }
  0x92   : > { %1041 = vmatprep.subr.bf16.mxu1 %v1155_v22  ;;  %p1264_p9 = pnand %p1263_p11, %p1257_p3 }
  0x94   : > { %1020 = vmatpush3.bf16.msra.mxu0 %v1156_v23 }
  0x95   : > { %1042 = vmatpush3.bf16.msra.mxu1 %v1157_v24  ;;  %1021 = vmatprep.subr.bf16.mxu0 %v1158_v25 }
  0x96   : > { %1043 = vmatprep.subr.bf16.mxu1 %v1159_v27 }
  0x98   : > { %1022 = vmatpush3.bf16.msra.mxu0 %v1160_v28 }
  0x99   : > { %1044 = vmatpush3.bf16.msra.mxu1 %v1161_v29  ;;  %1023 = vmatprep.subr.bf16.mxu0 %v1162_v30 }
  0x9a   : > { %1045 = vmatprep.subr.bf16.mxu1 %v1163_v32 }
  0x9c   : > { %1024 = vmatpush3.bf16.msra.mxu0 %v1164_v34 }
  0x9d   : > { %1046 = vmatpush3.bf16.msra.mxu1 %v1165_v35 }
  0x9f   : > { %632 = vmatmul.mubr.bf16.vlgmr.msra.gmra.mrb[0].mxu0 %v469_v46 }
  0xa0   : > { %775 = vmatmul.mubr.bf16.vlgmr.msra.gmra.mrb[0].mxu1 %v421_v42 }
 0x172   : > { %v1025_v54 = vpop.f32.mrb[0].mxu0 }
 0x173   : > { %v1047_v47 = vpop.f32.mrb[0].mxu1  ;;  %v1026_v56 = vpop.f32.mrb[1].mxu0 }
 0x174   : > { %v1048_v49 = vpop.f32.mrb[1].mxu1  ;;  %v1027_v57 = vadd.f32 %v1026_v56, %v1025_v54  ;;  %v1028_v59 = vpop.f32.mrb[2].mxu0 }
 0x175   : > { %v1049_v50 = vadd.f32 %v1048_v49, %v1047_v47  ;;  %v1050_v51 = vpop.f32.mrb[2].mxu1  ;;  %v1029_v60 = vpop.f32.mrb[3].mxu0 }
 0x176   : > { %v1051_v53 = vpop.f32.mrb[3].mxu1  ;;  %v645_v61 = vmul.f32 %v1027_v57, %v643_v55 }
 0x178   : > { %v777_v63 = vadd.f32 %v1049_v50, %v645_v61 }
 0x17a   : > { %v789_v1 = vadd.f32 %v1004_v62, %v777_v63 }
 0x17c   : > { %v798_v2 = vadd.f32 %v796_v0, %v789_v1 }
 0x17e   : > { %799 = vst [vmem:[%s399_s8] sm:$0xff] %v798_v2 }
 0x17f   : > { %1267 = shalt.err (!%p1264_p9)
}
 0x180   : > { %s1268_s23 = scalar_lea.hbm %s1654_s1, 128  ;;  %s1272_s9 = scalar_lea.hbm %s1710_s7, 256 }
 0x181   : > { %p1269_p8 = scmp.ne.s32.totalorder %s1654_s1, %s1268_s23  ;;  %p1273_p13 = scmp.lt.u32.totalorder %s1654_s1, %s1710_s7 }
 0x182   : > { %p1274_p1 = scmp.lt.u32.totalorder %s1272_s9, %s1268_s23  ;;  %p1276_p2 = scmp.lt.u32.totalorder %s1268_s23, %s1654_s1 }
 0x183   : > { %p1270_p5 = pnand %p1269_p8, %p1739_p12 }
 0x184   : > { %p1275_p10 = por %p1274_p1, %p1273_p13 }
 0x185   : > { %p1271_p7 = pneg %p1270_p5 }
 0x186   : > { %p1277_p0 = por %p1276_p2, %p1275_p10 }
 0x188   : > { %p1278_p3 = pnand %p1277_p0, %p1271_p7 }
 0x18a   : > { %1281 = shalt.err (!%p1278_p3)
}
 0x18b   : > { %1061 = dma.vmem_to_hbm [thread:$0]  (%p1739_p12), %s1656_s10, 128, %s1654_s1, %s801_s16  }
 0x18c PF: > { %s826_s18 = sand.u32 1, %s1320_s24   ;;  %p1740_p4 = scmp.ne.s32.totalorder %s1726_s17, 0 }
 0x18d   : > { %p1741_p6 = scmp.ge.s32.totalorder %s1340_s29, 2  ;;  %s827_s8 = scalar_lea.sflag [#allocation4], %s826_s18 }
 0x18f   : > { %p1075_p11 = pnand %p1741_p6, %p1740_p4 }
 0x191   : > { %1315 = dma.done.wait (!%p1075_p11), %s827_s8, 128  }
 0x192   : > { %1317 = vsyncadd (!%p1075_p11), %s827_s8, 4294967168  ;;  %s24_s29 = sadd.s32 1, %s1340_s29   ;;  %s1742_s14 = sld [smem:[#allocation12_spill]] }
 0x193   : > { %p21_p9 = scmp.ge.s32.totalorder %s24_s29, 4   ;;  %s1743_s24 = smov %s1324_s25 }
 0x194   : > { %s1744_s25 = smov %s1328_s26  ;;  %s1745_s26 = smov %s1437_s13 }
 0x195   : > { %s1746_s27 = smov %s1336_s28  ;;  %23 = sbr.rel (!%p21_p9) target bundleno = 10 (0xa), region = 120 }
 0x198   : > { %s1747_s28 = smov %s1742_s14 }
 0x19c   :  { %832 = vsyncpa [#allocation3], 1 }
 0x19d   :  { %834 = vsyncpa [#allocation3 + $0x1], 1 }
 0x19e   :  { %835 = vsyncpa [#allocation6], 1 }
 0x19f   :  { %837 = vsyncpa [#allocation6 + $0x1], 1 }
 0x1a0   :  { %838 = vsyncpa [#allocation4], 1 }
 0x1a1   :  { %840 = vsyncpa [#allocation4 + $0x1], 1 }

</bundles_post_ra>
